<compile_context>
chip_gen: v7x
topology: tpu7x:2x2x1
jax: 0.10.0
libtpu: 0.0.40
codegen_flags: <defaults>
</compile_context>

<pallas_src>
import jax
import jax.numpy as jnp
from jax.experimental import pallas as pl
from jax.experimental.pallas import tpu as pltpu


def _discriminator_kernel(x_ref, w_ref, b_ref, o_ref):
    """Per-batch-tile: fc (matmul + bias) followed by 2-class log-softmax."""
    x = x_ref[...]                                  # (TB, E), native dtype
    w = w_ref[...]                                  # (E, 2), same dtype as x
    b = b_ref[...].astype(jnp.float32)              # (1, 2)

    logits = jnp.dot(x, w, preferred_element_type=jnp.float32) + b   # (TB, 2) f32

    # 2-class log-softmax without lane reductions:
    #   lse = l0 + softplus(l1 - l0);  softplus(z) = max(z, 0) + log(1 + exp(-|z|))
    l0 = logits[:, 0:1]                             # (TB, 1)
    d = logits[:, 1:2] - l0                         # (TB, 1)
    softplus_d = jnp.maximum(d, 0.0) + jnp.log(1.0 + jnp.exp(-jnp.abs(d)))
    lse = l0 + softplus_d                           # (TB, 1)
    o_ref[...] = (logits - lse).astype(o_ref.dtype)


def _round_up(v, m):
    return ((v + m - 1) // m) * m


def abstract_discriminator_forward(x, weight, bias, *,
                                   max_tile_rows=None,
                                   x_buffer_bytes=4 * 1024 * 1024):
    """x: [B, E] encoded features; weight: [E, 2]; bias: [2]. Returns log-probs [B, 2] (f32)."""
    B, E = x.shape

    # Keep weights in the same dtype as x so bf16 inputs take the native MXU
    # bf16 path (f32 accumulation happens via preferred_element_type).
    weight_in = weight.astype(x.dtype)
    bias2d = bias.reshape(1, 2).astype(jnp.float32)

    # --- tile sizing ---------------------------------------------------------
    # Largest 8-row-aligned tile whose x slab fits one double-buffered VMEM
    # buffer of `x_buffer_bytes`.
    row_bytes = max(int(E) * jnp.dtype(x.dtype).itemsize, 1)
    rows_cap = max(8, ((x_buffer_bytes // row_bytes) // 8) * 8)
    if max_tile_rows is not None:
        rows_cap = min(rows_cap, max(8, (int(max_tile_rows) // 8) * 8))

    b_rounded = _round_up(B, 8)
    if b_rounded <= rows_cap:
        tile = b_rounded                            # single grid step, no waste
    else:
        # Minimal number of near-equal tiles -> < 8 padded rows per tile.
        n_tiles = pl.cdiv(b_rounded, rows_cap)
        tile = _round_up(pl.cdiv(b_rounded, n_tiles), 8)

    padded_B = pl.cdiv(B, tile) * tile
    x_in = jnp.pad(x, ((0, padded_B - B), (0, 0))) if padded_B != B else x

    out = pl.pallas_call(
        _discriminator_kernel,
        out_shape=jax.ShapeDtypeStruct((padded_B, 2), jnp.float32),
        grid_spec=pltpu.PrefetchScalarGridSpec(
            num_scalar_prefetch=0,
            grid=(padded_B // tile,),
            in_specs=[
                pl.BlockSpec((tile, E), lambda i: (i, 0)),  # streaming x tile
                pl.BlockSpec((E, 2), lambda i: (0, 0)),     # fc weight (resident)
                pl.BlockSpec((1, 2), lambda i: (0, 0)),     # bias (resident)
            ],
            out_specs=pl.BlockSpec((tile, 2), lambda i: (i, 0)),
        ),
        compiler_params=pltpu.CompilerParams(
            dimension_semantics=("parallel",)),
    )(x_in, weight_in, bias2d)

    return out[:B]


def _reference_forward(x, weight, bias):
    logits = x.astype(jnp.float32) @ weight.astype(jnp.float32) + bias
    return jax.nn.log_softmax(logits, axis=-1)


if __name__ == "__main__":
    emb_width = 32
    batch = 16

    key = jax.random.PRNGKey(0)
    kx, kw, kb = jax.random.split(key, 3)

    # Encoded features (encode == identity here; see TODO above).
    x = jax.random.normal(kx, (batch, emb_width), dtype=jnp.float32)

    # nn.Linear(emb_width, 2) default init: U(-1/sqrt(E), 1/sqrt(E)).
    bound = 1.0 / (emb_width ** 0.5)
    # Stored as [E, 2] so the kernel computes x @ W (== x @ W_torch.T).
    weight = jax.random.uniform(kw, (emb_width, 2), jnp.float32, -bound, bound)
    bias = jax.random.uniform(kb, (2,), jnp.float32, -bound, bound)

    probs = jax.block_until_ready(abstract_discriminator_forward(x, weight, bias))
    ref = _reference_forward(x, weight, bias)
    assert probs.shape == (batch, 2)
    assert jnp.allclose(probs, ref, atol=1e-5, rtol=1e-5), "mismatch vs reference"

    # Non-divisible batch -> exercises the pad/slice path.
    x2 = jax.random.normal(kx, (batch + 5, emb_width), dtype=jnp.float32)
    probs2 = jax.block_until_ready(abstract_discriminator_forward(x2, weight, bias))
    ref2 = _reference_forward(x2, weight, bias)
    assert probs2.shape == (batch + 5, 2)
    assert jnp.allclose(probs2, ref2, atol=1e-5, rtol=1e-5), "mismatch (padded path)"

    # Multi-tile grid path (tile cap forced small so several grid steps run).
    x3 = jax.random.normal(kx, (200, emb_width), dtype=jnp.float32)
    probs3 = jax.block_until_ready(
        abstract_discriminator_forward(x3, weight, bias, max_tile_rows=64))
    ref3 = _reference_forward(x3, weight, bias)
    assert probs3.shape == (200, 2)
    assert jnp.allclose(probs3, ref3, atol=1e-5, rtol=1e-5), "mismatch (multi-tile path)"

    print("KERNEL_OK")
</pallas_src>

<mosaic_0001>
module attributes {stable_mosaic.version = 11 : i64} {
  func.func @_discriminator_kernel(%arg0: i32, %arg1: memref<16x32xf32, #tpu.memory_space<vmem>>, %arg2: memref<32x2xf32, #tpu.memory_space<vmem>>, %arg3: memref<1x2xf32, #tpu.memory_space<vmem>>, %arg4: memref<16x2xf32, #tpu.memory_space<vmem>>) attributes {dimension_semantics = [#tpu.dimension_semantics<parallel>], iteration_bounds = array<i64: 1>, scalar_prefetch = 0 : i64, scratch_operands = 0 : i64, tpu.core_type = #tpu.core_type<tc>, window_params = [{transform_indices = @transform_0, window_bounds = array<i64: 16, 32>}, {pipeline_mode = #tpu.pipeline_mode<synchronous>, transform_indices = @transform_1, window_bounds = array<i64: 32, 2>}, {pipeline_mode = #tpu.pipeline_mode<synchronous>, transform_indices = @transform_2, window_bounds = array<i64: 1, 2>}, {transform_indices = @transform_3, window_bounds = array<i64: 16, 2>}]} {
    %c0 = arith.constant 0 : index
    %c0_0 = arith.constant 0 : index
    %0 = vector.load %arg1[%c0, %c0_0] : memref<16x32xf32, #tpu.memory_space<vmem>>, vector<16x32xf32>
    %c0_1 = arith.constant 0 : index
    %c0_2 = arith.constant 0 : index
    %1 = vector.load %arg2[%c0_1, %c0_2] : memref<32x2xf32, #tpu.memory_space<vmem>>, vector<32x2xf32>
    %c0_3 = arith.constant 0 : index
    %c0_4 = arith.constant 0 : index
    %2 = vector.load %arg3[%c0_3, %c0_4] : memref<1x2xf32, #tpu.memory_space<vmem>>, vector<1x2xf32>
    %cst = arith.constant dense<0.000000e+00> : vector<16x2xf32>
    %3 = tpu.matmul %0, %1, %cst {dimension_numbers = #tpu.dot_dimension_numbers<[1], [0], [0], [1], [0, 0, 1, 1], [], []>} : vector<16x32xf32>, vector<32x2xf32>, vector<16x2xf32> -> vector<16x2xf32>
    %4 = vector.broadcast %2 : vector<1x2xf32> to vector<16x2xf32>
    %5 = arith.addf %3, %4 : vector<16x2xf32>
    %6 = vector.extract_strided_slice %5 {offsets = [0, 0], sizes = [16, 1], strides = [1, 1]} : vector<16x2xf32> to vector<16x1xf32>
    %7 = vector.extract_strided_slice %5 {offsets = [0, 1], sizes = [16, 1], strides = [1, 1]} : vector<16x2xf32> to vector<16x1xf32>
    %8 = arith.subf %7, %6 : vector<16x1xf32>
    %cst_5 = arith.constant 0.000000e+00 : f32
    %9 = vector.broadcast %cst_5 : f32 to vector<16x1xf32>
    %10 = arith.maximumf %8, %9 : vector<16x1xf32>
    %11 = math.absf %8 : vector<16x1xf32>
    %cst_6 = arith.constant 0.000000e+00 : f32
    %12 = vector.broadcast %cst_6 : f32 to vector<16x1xf32>
    %13 = arith.subf %12, %11 : vector<16x1xf32>
    %14 = math.exp %13 : vector<16x1xf32>
    %cst_7 = arith.constant 1.000000e+00 : f32
    %15 = vector.broadcast %cst_7 : f32 to vector<16x1xf32>
    %16 = arith.addf %15, %14 : vector<16x1xf32>
    %17 = math.log %16 : vector<16x1xf32>
    %18 = arith.addf %10, %17 : vector<16x1xf32>
    %19 = arith.addf %6, %18 : vector<16x1xf32>
    %20 = vector.broadcast %19 : vector<16x1xf32> to vector<16x2xf32>
    %21 = arith.subf %5, %20 : vector<16x2xf32>
    %c0_8 = arith.constant 0 : index
    %c0_9 = arith.constant 0 : index
    %22 = vector.load %arg4[%c0_8, %c0_9] : memref<16x2xf32, #tpu.memory_space<vmem>>, vector<16x2xf32>
    tpu.vector_store %arg4[%c0_8, %c0_9], %21 {strides = array<i32>} : memref<16x2xf32, #tpu.memory_space<vmem>>, vector<16x2xf32>,
    return
  }
  func.func @transform_0(%arg0: i32) -> (i32, i32) {
    %c0_i32 = arith.constant 0 : i32
    %c0_i32_0 = arith.constant 0 : i32
    return %arg0, %c0_i32 : i32, i32
  }
  func.func @transform_1(%arg0: i32) -> (i32, i32) {
    %c0_i32 = arith.constant 0 : i32
    %c0_i32_0 = arith.constant 0 : i32
    %c0_i32_1 = arith.constant 0 : i32
    return %c0_i32, %c0_i32_0 : i32, i32
  }
  func.func @transform_2(%arg0: i32) -> (i32, i32) {
    %c0_i32 = arith.constant 0 : i32
    %c0_i32_0 = arith.constant 0 : i32
    %c0_i32_1 = arith.constant 0 : i32
    return %c0_i32, %c0_i32_0 : i32, i32
  }
  func.func @transform_3(%arg0: i32) -> (i32, i32) {
    %c0_i32 = arith.constant 0 : i32
    %c0_i32_0 = arith.constant 0 : i32
    return %arg0, %c0_i32 : i32, i32
  }
}

</mosaic_0001>

<bundles_post_ra>
// kernel: tpu_custom_call.1
= control target key start
LH: loop header
LB: loop body
LE: loop exit
PB: predicated region body
PF: predicated region fallthrough
CT: control target
= control target key end

     0   :  { %vm27_vm0 = vcmask 261120   ;;  %v208_v27 = vmov 0   ;;  %vm159_vm1 = vcmask 15360   ;;  %s257_s1 = inlined_call_operand.vmem [shape: f32[32,2], index: 1, kind: input, shape index: {}]   ;;  %s258_s0 = inlined_call_operand.vmem [shape: f32[16,32], index: 0, kind: input, shape index: {}]   ;;  %s259_s2 = inlined_call_operand.vmem [shape: f32[1,2], index: 2, kind: input, shape index: {}]   ;;  %s260_s3 = inlined_call_operand.vmem [shape: f32[16,2], index: 3, kind: output, shape index: {}]  }
   0x1   :  { %v16_v0 = vld [vmem:[%s257_s1] sm:$0xff]  ;;  %v17_v1 = vld [vmem:[%s257_s1 + $0x8] sm:$0xff]  ;;  %v18_v2 = vld [vmem:[%s257_s1 + $0x10] sm:$0xff]  ;;  %197 = vset.pattern.permute.xlu0 %v208_v27  ;;  %198 = vset.pattern.permute.xlu1 %v208_v27 }
   0x2   :  { %v186_v3 = vpack.c.bf16 %v17_v1, %v16_v0  ;;  %v19_v4 = vld [vmem:[%s257_s1 + $0x18] sm:$0xff]  ;;  %v14_v5 = vld [vmem:[%s258_s0] sm:$0xff]  ;;  %v15_v7 = vld [vmem:[%s258_s0 + $0x8] sm:$0xff]  ;;  %s207_s1 = smov 1   ;;  %s209_s0 = smov 127  }
   0x3   :  { %v190_v6 = vpack.c.bf16 %v19_v4, %v18_v2  ;;  %183 = vmatprep.mubr.msk.f32.mxu0 %vm27_vm0, %v14_v5  ;;  %v166_v8 = vld [vmem:[%s259_s2] ss:$0 sm:$0xff] }
   0x4   :  { %187 = vmatprep.subr.bf16.mxu0 %v186_v3 }
   0x5   :  { %189 = vmatpush3.bf16.msra.mxu0 %v186_v3 }
   0x6   :  { %191 = vmatprep.subr.bf16.mxu0 %v190_v6 }
   0x9   :  { %193 = vmatpush3.bf16.msra.mxu0 %v190_v6 }
   0xc   :  { %184 = vmatmul.mubr.msk.f32.vlgmr.msra.gmra.mrb[0].mxu0 %vm27_vm0, %v15_v7 }
  0xdf   :  { %v185_v9 = vpop.f32.mrb[0].mxu0 }
  0xe0   :  { %v100_v10 = vpop.f32.mrb[1].mxu0  ;;  %v106_v12 = vadd.f32 %v185_v9, %v166_v8 }
  0xe1   :  { %v101_v11 = vadd.f32 %v166_v8, %v100_v10 }
  0xe3   :  { %111 = vrot.lane.b32.xlu0 %v101_v11, %s207_s1 }
  0xe7   :  { %113 = vrot.lane.b32.xlu0 %v106_v12, %s207_s1 }
 0x155   :  { %v112_v13 = vpop.permute.xlu0 %111 }
 0x156   :  { %v117_v14 = vsub.f32 %v101_v11, %v112_v13 }
 0x158   :  { %v121_v15 = vand.u32 2147483647, %v117_v14  ;;  %v119_v29 = vmax.f32 %v117_v14, 0.0 }
 0x159   :  { %v114_v16 = vpop.permute.xlu0 %113 }
 0x15a   :  { %v123_v17 = vsub.f32 0.0, %v121_v15  ;;  %v118_v18 = vsub.f32 %v106_v12, %v114_v16 }
 0x15c   :  { %v125_v19 = vmul.f32 1.442695, %v123_v17  ;;  %v122_v20 = vand.u32 2147483647, %v118_v18  ;;  %v120_v33 = vmax.f32 %v118_v18, 0.0 }
 0x15e   :  { %199 = vpow2.f32 %v125_v19  ;;  %v124_v21 = vsub.f32 0.0, %v122_v20 }
 0x160   :  { %v127_v22 = vmul.f32 1.442695, %v124_v21 }
 0x162   :  { %201 = vpow2.f32 %v127_v22 }
 0x168   :  { %v200_v23 = vpop.eup %199 }
 0x169   :  { %v129_v24 = vadd.f32 1.0, %v200_v23 }
 0x16b   :  { %203 = vlog2.f32 %v129_v24 }
 0x16c   :  { %v202_v25 = vpop.eup %201 }
 0x16d   :  { %v130_v26 = vadd.f32 1.0, %v202_v25 }
 0x16f   :  { %205 = vlog2.f32 %v130_v26 }
 0x175   :  { %v204_v28 = vpop.eup %203 }
 0x176   :  { %v132_v30 = vmul.f32 0.6931472, %v204_v28 }
 0x178   :  { %v135_v31 = vadd.f32 %v132_v30, %v119_v29 }
 0x179   :  { %v206_v32 = vpop.eup %205 }
 0x17a   :  { %139 = vrot.lane.b32.xlu1 %v135_v31, %s209_s0  ;;  %v134_v34 = vmul.f32 0.6931472, %v206_v32 }
 0x17c   :  { %v136_v35 = vadd.f32 %v134_v34, %v120_v33 }
 0x17e   :  { %141 = vrot.lane.b32.xlu1 %v136_v35, %s209_s0 }
 0x1ec   :  { %v140_v36 = vpop.permute.xlu1 %139 }
 0x1ed   :  { %v145_v37 = vadd.f32 %v140_v36, %v101_v11 }
 0x1ef   :  { %149 = vperm.xlu0 %197, %v145_v37  }
 0x1f0   :  { %v142_v38 = vpop.permute.xlu1 %141 }
 0x1f1   :  { %v146_v39 = vadd.f32 %v142_v38, %v106_v12 }
 0x1f3   :  { %154 = vperm.xlu1 %198, %v146_v39  }
 0x26e   :  { %v150_v40 = vpop.permute.xlu0 %149 }
 0x26f   :  { %v157_v41 = vsub.f32 %v101_v11, %v150_v40 }
 0x271   :  { %160 = vst.msk [vmem:[%s260_s3] sm:$0xff] %vm159_vm1, %v157_v41 }
 0x272   :  { %v155_v42 = vpop.permute.xlu1 %154 }
 0x273   :  { %v158_v43 = vsub.f32 %v106_v12, %v155_v42 }
 0x275   :  { %161 = vst.msk [vmem:[%s260_s3 + $0x8] sm:$0xff] %vm159_vm1, %v158_v43 }

</bundles_post_ra>
